<compile_context>
chip_gen: v6e
topology: v6e:2x2x1
jax: 0.10.0
libtpu: 0.0.40
codegen_flags: <defaults>
</compile_context>

<pallas_src>
import jax
import jax.numpy as jnp
from jax.experimental import pallas as pl
from jax.experimental.pallas import tpu as pltpu

NUM_HEADS = 8
TILE_B = 512          # batch tile: multiple of 8 (f32 sublanes); per-step body is tiny,
                      # so large tiles amortize the ~0.35 us grid-step overhead.


# --------------------------------------------------------------------------- kernel
def neural_memory_kernel(
    x_ref,                                          # (TB, Din)
    w1_ref, b1_ref, w2_ref, b2_ref,                 # encoder
    wq_ref, bq_ref,                                 # q proj (H,H)/(1,H), 1/sqrt(hd) folded in
    kblk_ref,                                       # block-diag packed keys (H, nH*M)
    vo_ref, bo_ref,                                 # folded V@Wo (nH*M, H), out-proj bias (1,H)
    wd1e_ref, wd1a_ref, bd1_ref, wd2_ref, bd2_ref,  # decoder (wd1 split into enc/att halves)
    out_ref, attw_ref,                              # (TB, Din), (TB, M)
):
    f32 = jnp.float32
    x = x_ref[...]

    # ---- encoder: Linear -> ReLU -> Dropout(id) -> Linear -> ReLU -> Dropout(id)
    h = jnp.maximum(
        jnp.dot(x, w1_ref[...], preferred_element_type=f32) + b1_ref[...], 0.0)
    enc = jnp.maximum(
        jnp.dot(h, w2_ref[...], preferred_element_type=f32) + b2_ref[...], 0.0)      # (TB, H)

    tb = enc.shape[0]
    n_heads = NUM_HEADS
    hm = kblk_ref.shape[1]          # nH * M
    mem = hm // n_heads             # M

    # ---- attention: single lane-dense q projection (softmax scale folded offline)
    q = jnp.dot(enc, wq_ref[...], preferred_element_type=f32) + bq_ref[...]          # (TB, H)

    # per-head scores via ONE matmul against the block-diagonal packed key matrix
    s = jnp.dot(q, kblk_ref[...], preferred_element_type=f32)                        # (TB, nH*M)

    # per-head softmax: keep M on the lane axis, reduce over lanes only
    s3 = s.reshape(tb, n_heads, mem)                                                  # (TB,nH,M)
    s3 = s3 - jnp.max(s3, axis=-1, keepdims=True)
    p3 = jnp.exp(s3)
    p3 = p3 / jnp.sum(p3, axis=-1, keepdims=True)                                     # exact

    # PyTorch MHA default: attention weights averaged over heads
    attw_ref[...] = jnp.sum(p3, axis=1) * (1.0 / n_heads)                             # (TB, M)

    # attention output with V and Wo folded offline: one (TB,nH*M)x(nH*M,H) matmul
    attended = jnp.dot(p3.reshape(tb, hm), vo_ref[...],
                       preferred_element_type=f32) + bo_ref[...]                      # (TB, H)

    # ---- decoder on concat([enc, attended]) expressed as two matmuls (wd1 pre-split)
    d = jnp.maximum(
        jnp.dot(enc, wd1e_ref[...], preferred_element_type=f32)
        + jnp.dot(attended, wd1a_ref[...], preferred_element_type=f32)
        + bd1_ref[...], 0.0)
    out_ref[...] = jnp.dot(d, wd2_ref[...], preferred_element_type=f32) + bd2_ref[...]

    # TODO(synk): training-mode memory-bank writeback (_update_memory) is a stateful
    # side effect (rolling pointer into the parameter) and is not modeled here
    # (eval-mode forward only).


# --------------------------------------------------------------------------- wrapper
def _round_up(v, m):
    return ((v + m - 1) // m) * m


def _choose_tile_b(batch, tile_b):
    """Pick the batch tile. Prefer >=2 grid steps when the batch allows it so
    dimension_semantics=("parallel",) can shard across v7x's two TensorCores."""
    if batch > tile_b:
        return tile_b
    if batch >= 16:
        half = _round_up(pl.cdiv(batch, 2), 8)
        if half < batch:
            return half
    return batch          # single (possibly non-8-aligned) block == full array dim


def neural_memory_forward(x, params, tile_b=TILE_B):
    # NOTE: for very small batches (< ~64 rows) a plain-XLA path would beat the kernel
    # launch overhead; kept on the kernel path here so the demo exercises Pallas.
    B, Din = x.shape
    hm = params["k_blk"].shape[1]
    M = hm // NUM_HEADS

    tb = _choose_tile_b(B, tile_b)
    grid_b = pl.cdiv(B, tb)          # no host-side pad: partial last block is masked

    args = (
        x,
        params["w1"], params["b1"], params["w2"], params["b2"],
        params["wq"], params["bq"],
        params["k_blk"],
        params["vo"], params["bo"],
        params["wd1_enc"], params["wd1_att"], params["bd1"],
        params["wd2"], params["bd2"],
    )

    in_specs = [pl.BlockSpec((tb, Din), lambda i: (i, 0))]       # x: tiled over batch
    for a in args[1:]:                                           # weights: VMEM-resident
        in_specs.append(pl.BlockSpec(a.shape, lambda i: (0, 0)))

    out, attw = pl.pallas_call(
        neural_memory_kernel,
        out_shape=(
            jax.ShapeDtypeStruct((B, Din), jnp.float32),
            jax.ShapeDtypeStruct((B, M), jnp.float32),
        ),
        grid=(grid_b,),
        in_specs=in_specs,
        out_specs=(
            pl.BlockSpec((tb, Din), lambda i: (i, 0)),
            pl.BlockSpec((tb, M), lambda i: (i, 0)),
        ),
        compiler_params=pltpu.CompilerParams(
            dimension_semantics=("parallel",),          # megacore on v7x, no-op elsewhere
            vmem_limit_bytes=48 * 1024 * 1024,          # > v5e 16 MiB default, <= v7x budget
        ),
    )(*args)

    return out, attw.reshape(B, 1, M)


# --------------------------------------------------------------------------- params
def init_params(key, input_size, hidden_size, memory_size):
    """Raw (PyTorch-layout-equivalent) parameters; all weights stored (in, out)."""
    ks = jax.random.split(key, 16)

    def lin(k, fan_in, fan_out):
        return jax.random.normal(k, (fan_in, fan_out), jnp.float32) / jnp.sqrt(float(fan_in))

    def bias(k, n):
        return (jax.random.normal(k, (1, n), jnp.float32) * 0.01).astype(jnp.float32)

    return {
        # encoder
        "w1": lin(ks[0], input_size, hidden_size),  "b1": bias(ks[1], hidden_size),
        "w2": lin(ks[2], hidden_size, hidden_size), "b2": bias(ks[3], hidden_size),
        # attention in/out projections
        "wq": lin(ks[4], hidden_size, hidden_size), "bq": bias(ks[5], hidden_size),
        "wk": lin(ks[6], hidden_size, hidden_size), "bk": bias(ks[7], hidden_size),
        "wv": lin(ks[8], hidden_size, hidden_size), "bv": bias(ks[9], hidden_size),
        "wo": lin(ks[10], hidden_size, hidden_size), "bo": bias(ks[11], hidden_size),
        # memory bank (nn.Parameter(torch.randn(...)))
        "memory_bank": jax.random.normal(ks[12], (memory_size, hidden_size), jnp.float32),
        # decoder
        "wd1": lin(ks[13], 2 * hidden_size, hidden_size), "bd1": bias(ks[14], hidden_size),
        "wd2": lin(ks[15], hidden_size, input_size),
        "bd2": jnp.zeros((1, input_size), jnp.float32),
    }


def prepare_params(raw):
    """One-time offline transforms for the lane-dense kernel layout:
      * fold 1/sqrt(head_dim) into the q projection,
      * project the batch-independent memory bank with Wk/Wv once,
      * pack per-head keys into a block-diagonal (H, nH*M) matrix,
      * fold V and the output projection Wo into one (nH*M, H) matrix,
      * split wd1 into its encoded / attended halves (concat -> two matmuls)."""
    n_heads = NUM_HEADS
    H = raw["w2"].shape[1]
    assert H % n_heads == 0
    hd = H // n_heads
    scale = 1.0 / jnp.sqrt(jnp.float32(hd))

    wq_scaled = raw["wq"] * scale
    bq_scaled = raw["bq"] * scale

    # memory-bank K/V: batch independent -> projected once here (plain XLA, not per tile)
    k = raw["memory_bank"] @ raw["wk"] + raw["bk"]                    # (M, H)
    v = raw["memory_bank"] @ raw["wv"] + raw["bv"]                    # (M, H)
    M = k.shape[0]

    # block-diagonal packed keys: K_blk[n*hd+d, n*M+m] = k[m, n*hd+d]
    k_heads = k.reshape(M, n_heads, hd).transpose(1, 2, 0)            # (nH, hd, M)
    k_blk = jnp.zeros((H, n_heads * M), jnp.float32)
    for n in range(n_heads):
        k_blk = k_blk.at[n * hd:(n + 1) * hd, n * M:(n + 1) * M].set(k_heads[n])

    # fold V and Wo: vo[n*M+m, :] = sum_d v[m, n*hd+d] * wo[n*hd+d, :]
    v_heads = v.reshape(M, n_heads, hd).transpose(1, 0, 2)            # (nH, M, hd)
    wo_heads = raw["wo"].reshape(n_heads, hd, H)                      # (nH, hd, H)
    vo = jnp.einsum("nmd,ndh->nmh", v_heads, wo_heads).reshape(n_heads * M, H)

    return {
        "w1": raw["w1"], "b1": raw["b1"], "w2": raw["w2"], "b2": raw["b2"],
        "wq": wq_scaled, "bq": bq_scaled,
        "k_blk": k_blk,
        "vo": vo, "bo": raw["bo"],
        "wd1_enc": raw["wd1"][:H], "wd1_att": raw["wd1"][H:], "bd1": raw["bd1"],
        "wd2": raw["wd2"], "bd2": raw["bd2"],
    }


# --------------------------------------------------------------------------- pure-JAX reference
def reference_forward(x, raw):
    relu = lambda t: jnp.maximum(t, 0.0)
    enc = relu(relu(x @ raw["w1"] + raw["b1"]) @ raw["w2"] + raw["b2"])
    H = enc.shape[1]
    hd = H // NUM_HEADS
    q = enc @ raw["wq"] + raw["bq"]
    k = raw["memory_bank"] @ raw["wk"] + raw["bk"]
    v = raw["memory_bank"] @ raw["wv"] + raw["bv"]
    B, M = x.shape[0], k.shape[0]
    qh = q.reshape(B, NUM_HEADS, hd).transpose(1, 0, 2) / jnp.sqrt(jnp.float32(hd))
    kh = k.reshape(M, NUM_HEADS, hd).transpose(1, 0, 2)
    vh = v.reshape(M, NUM_HEADS, hd).transpose(1, 0, 2)
    p = jax.nn.softmax(jnp.einsum("nbd,nmd->nbm", qh, kh), axis=-1)
    attw = p.mean(axis=0)
    ah = jnp.einsum("nbm,nmd->nbd", p, vh)
    attended = ah.transpose(1, 0, 2).reshape(B, H) @ raw["wo"] + raw["bo"]
    comb = jnp.concatenate([enc, attended], axis=-1)
    out = relu(comb @ raw["wd1"] + raw["bd1"]) @ raw["wd2"] + raw["bd2"]
    return out, attw.reshape(B, 1, M)


# --------------------------------------------------------------------------- main
if __name__ == "__main__":
    B, INPUT, HIDDEN, MEMORY = 2, 64, 32, 128   # HIDDEN divisible by 8 heads
    key = jax.random.PRNGKey(0)
    kx, kp = jax.random.split(key)
    x = jax.random.normal(kx, (B, INPUT), jnp.float32)

    raw = init_params(kp, INPUT, HIDDEN, MEMORY)
    params = prepare_params(raw)

    output, attention_weights = neural_memory_forward(x, params)
    jax.block_until_ready((output, attention_weights))

    assert output.shape == (B, INPUT)
    assert attention_weights.shape == (B, 1, MEMORY)

    ref_out, ref_attw = reference_forward(x, raw)
    assert jnp.allclose(output, ref_out, atol=5e-2, rtol=5e-2)
    assert jnp.allclose(attention_weights, ref_attw, atol=5e-2, rtol=5e-2)

    print("KERNEL_OK")
</pallas_src>

<mosaic_0001>
module attributes {stable_mosaic.version = 11 : i64} {
  func.func @neural_memory_kernel(%arg0: i32, %arg1: memref<2x64xf32, #tpu.memory_space<vmem>>, %arg2: memref<64x32xf32, #tpu.memory_space<vmem>>, %arg3: memref<1x32xf32, #tpu.memory_space<vmem>>, %arg4: memref<32x32xf32, #tpu.memory_space<vmem>>, %arg5: memref<1x32xf32, #tpu.memory_space<vmem>>, %arg6: memref<32x32xf32, #tpu.memory_space<vmem>>, %arg7: memref<1x32xf32, #tpu.memory_space<vmem>>, %arg8: memref<32x1024xf32, #tpu.memory_space<vmem>>, %arg9: memref<1024x32xf32, #tpu.memory_space<vmem>>, %arg10: memref<1x32xf32, #tpu.memory_space<vmem>>, %arg11: memref<32x32xf32, #tpu.memory_space<vmem>>, %arg12: memref<32x32xf32, #tpu.memory_space<vmem>>, %arg13: memref<1x32xf32, #tpu.memory_space<vmem>>, %arg14: memref<32x64xf32, #tpu.memory_space<vmem>>, %arg15: memref<1x64xf32, #tpu.memory_space<vmem>>, %arg16: memref<2x64xf32, #tpu.memory_space<vmem>>, %arg17: memref<2x128xf32, #tpu.memory_space<vmem>>) attributes {dimension_semantics = [#tpu.dimension_semantics<parallel>], iteration_bounds = array<i64: 1>, scalar_prefetch = 0 : i64, scratch_operands = 0 : i64, tpu.core_type = #tpu.core_type<tc>, window_params = [{transform_indices = @transform_0, window_bounds = array<i64: 2, 64>}, {pipeline_mode = #tpu.pipeline_mode<synchronous>, transform_indices = @transform_1, window_bounds = array<i64: 64, 32>}, {pipeline_mode = #tpu.pipeline_mode<synchronous>, transform_indices = @transform_2, window_bounds = array<i64: 1, 32>}, {pipeline_mode = #tpu.pipeline_mode<synchronous>, transform_indices = @transform_3, window_bounds = array<i64: 32, 32>}, {pipeline_mode = #tpu.pipeline_mode<synchronous>, transform_indices = @transform_4, window_bounds = array<i64: 1, 32>}, {pipeline_mode = #tpu.pipeline_mode<synchronous>, transform_indices = @transform_5, window_bounds = array<i64: 32, 32>}, {pipeline_mode = #tpu.pipeline_mode<synchronous>, transform_indices = @transform_6, window_bounds = array<i64: 1, 32>}, {pipeline_mode = #tpu.pipeline_mode<synchronous>, transform_indices = @transform_7, window_bounds = array<i64: 32, 1024>}, {pipeline_mode = #tpu.pipeline_mode<synchronous>, transform_indices = @transform_8, window_bounds = array<i64: 1024, 32>}, {pipeline_mode = #tpu.pipeline_mode<synchronous>, transform_indices = @transform_9, window_bounds = array<i64: 1, 32>}, {pipeline_mode = #tpu.pipeline_mode<synchronous>, transform_indices = @transform_10, window_bounds = array<i64: 32, 32>}, {pipeline_mode = #tpu.pipeline_mode<synchronous>, transform_indices = @transform_11, window_bounds = array<i64: 32, 32>}, {pipeline_mode = #tpu.pipeline_mode<synchronous>, transform_indices = @transform_12, window_bounds = array<i64: 1, 32>}, {pipeline_mode = #tpu.pipeline_mode<synchronous>, transform_indices = @transform_13, window_bounds = array<i64: 32, 64>}, {pipeline_mode = #tpu.pipeline_mode<synchronous>, transform_indices = @transform_14, window_bounds = array<i64: 1, 64>}, {transform_indices = @transform_15, window_bounds = array<i64: 2, 64>}, {transform_indices = @transform_16, window_bounds = array<i64: 2, 128>}]} {
    %c0 = arith.constant 0 : index
    %c0_0 = arith.constant 0 : index
    %0 = vector.load %arg1[%c0, %c0_0] : memref<2x64xf32, #tpu.memory_space<vmem>>, vector<2x64xf32>
    %c0_1 = arith.constant 0 : index
    %c0_2 = arith.constant 0 : index
    %1 = vector.load %arg2[%c0_1, %c0_2] : memref<64x32xf32, #tpu.memory_space<vmem>>, vector<64x32xf32>
    %cst = arith.constant dense<0.000000e+00> : vector<2x32xf32>
    %2 = tpu.matmul %0, %1, %cst {dimension_numbers = #tpu.dot_dimension_numbers<[1], [0], [0], [1], [0, 0, 1, 1], [], []>} : vector<2x64xf32>, vector<64x32xf32>, vector<2x32xf32> -> vector<2x32xf32>
    %c0_3 = arith.constant 0 : index
    %c0_4 = arith.constant 0 : index
    %3 = vector.load %arg3[%c0_3, %c0_4] : memref<1x32xf32, #tpu.memory_space<vmem>>, vector<1x32xf32>
    %4 = vector.broadcast %3 : vector<1x32xf32> to vector<2x32xf32>
    %5 = arith.addf %2, %4 : vector<2x32xf32>
    %cst_5 = arith.constant 0.000000e+00 : f32
    %6 = vector.broadcast %cst_5 : f32 to vector<2x32xf32>
    %7 = arith.maximumf %5, %6 : vector<2x32xf32>
    %c0_6 = arith.constant 0 : index
    %c0_7 = arith.constant 0 : index
    %8 = vector.load %arg4[%c0_6, %c0_7] : memref<32x32xf32, #tpu.memory_space<vmem>>, vector<32x32xf32>
    %cst_8 = arith.constant dense<0.000000e+00> : vector<2x32xf32>
    %9 = tpu.matmul %7, %8, %cst_8 {dimension_numbers = #tpu.dot_dimension_numbers<[1], [0], [0], [1], [0, 0, 1, 1], [], []>} : vector<2x32xf32>, vector<32x32xf32>, vector<2x32xf32> -> vector<2x32xf32>
    %c0_9 = arith.constant 0 : index
    %c0_10 = arith.constant 0 : index
    %10 = vector.load %arg5[%c0_9, %c0_10] : memref<1x32xf32, #tpu.memory_space<vmem>>, vector<1x32xf32>
    %11 = vector.broadcast %10 : vector<1x32xf32> to vector<2x32xf32>
    %12 = arith.addf %9, %11 : vector<2x32xf32>
    %cst_11 = arith.constant 0.000000e+00 : f32
    %13 = vector.broadcast %cst_11 : f32 to vector<2x32xf32>
    %14 = arith.maximumf %12, %13 : vector<2x32xf32>
    %c0_12 = arith.constant 0 : index
    %c0_13 = arith.constant 0 : index
    %15 = vector.load %arg6[%c0_12, %c0_13] : memref<32x32xf32, #tpu.memory_space<vmem>>, vector<32x32xf32>
    %cst_14 = arith.constant dense<0.000000e+00> : vector<2x32xf32>
    %16 = tpu.matmul %14, %15, %cst_14 {dimension_numbers = #tpu.dot_dimension_numbers<[1], [0], [0], [1], [0, 0, 1, 1], [], []>} : vector<2x32xf32>, vector<32x32xf32>, vector<2x32xf32> -> vector<2x32xf32>
    %c0_15 = arith.constant 0 : index
    %c0_16 = arith.constant 0 : index
    %17 = vector.load %arg7[%c0_15, %c0_16] : memref<1x32xf32, #tpu.memory_space<vmem>>, vector<1x32xf32>
    %18 = vector.broadcast %17 : vector<1x32xf32> to vector<2x32xf32>
    %19 = arith.addf %16, %18 : vector<2x32xf32>
    %c0_17 = arith.constant 0 : index
    %c0_18 = arith.constant 0 : index
    %20 = vector.load %arg8[%c0_17, %c0_18] : memref<32x1024xf32, #tpu.memory_space<vmem>>, vector<32x1024xf32>
    %cst_19 = arith.constant dense<0.000000e+00> : vector<2x1024xf32>
    %21 = tpu.matmul %19, %20, %cst_19 {dimension_numbers = #tpu.dot_dimension_numbers<[1], [0], [0], [1], [0, 0, 1, 1], [], []>} : vector<2x32xf32>, vector<32x1024xf32>, vector<2x1024xf32> -> vector<2x1024xf32>
    %22 = vector.shape_cast %21 : vector<2x1024xf32> to vector<2x8x128xf32>
    %cst_20 = arith.constant dense<0xFF800000> : vector<2x8xf32>
    %23 = vector.multi_reduction <maximumf>, %22, %cst_20 [2] : vector<2x8x128xf32> to vector<2x8xf32>
    %24 = vector.shape_cast %23 : vector<2x8xf32> to vector<2x8x1xf32>
    %25 = vector.broadcast %24 : vector<2x8x1xf32> to vector<2x8x128xf32>
    %26 = arith.subf %22, %25 : vector<2x8x128xf32>
    %27 = math.exp %26 : vector<2x8x128xf32>
    %cst_21 = arith.constant dense<0.000000e+00> : vector<2x8xf32>
    %28 = vector.multi_reduction <add>, %27, %cst_21 [2] : vector<2x8x128xf32> to vector<2x8xf32>
    %29 = vector.shape_cast %28 : vector<2x8xf32> to vector<2x8x1xf32>
    %30 = vector.broadcast %29 : vector<2x8x1xf32> to vector<2x8x128xf32>
    %31 = arith.divf %27, %30 : vector<2x8x128xf32>
    %cst_22 = arith.constant dense<0.000000e+00> : vector<2x128xf32>
    %32 = vector.multi_reduction <add>, %31, %cst_22 [1] : vector<2x8x128xf32> to vector<2x128xf32>
    %cst_23 = arith.constant 1.250000e-01 : f32
    %33 = vector.broadcast %cst_23 : f32 to vector<2x128xf32>
    %34 = arith.mulf %32, %33 : vector<2x128xf32>
    %c0_24 = arith.constant 0 : index
    %c0_25 = arith.constant 0 : index
    %35 = vector.load %arg17[%c0_24, %c0_25] : memref<2x128xf32, #tpu.memory_space<vmem>>, vector<2x128xf32>
    tpu.vector_store %arg17[%c0_24, %c0_25], %34 {strides = array<i32>} : memref<2x128xf32, #tpu.memory_space<vmem>>, vector<2x128xf32>,
    %36 = vector.shape_cast %31 : vector<2x8x128xf32> to vector<2x1024xf32>
    %c0_26 = arith.constant 0 : index
    %c0_27 = arith.constant 0 : index
    %37 = vector.load %arg9[%c0_26, %c0_27] : memref<1024x32xf32, #tpu.memory_space<vmem>>, vector<1024x32xf32>
    %cst_28 = arith.constant dense<0.000000e+00> : vector<2x32xf32>
    %38 = tpu.matmul %36, %37, %cst_28 {dimension_numbers = #tpu.dot_dimension_numbers<[1], [0], [0], [1], [0, 0, 1, 1], [], []>} : vector<2x1024xf32>, vector<1024x32xf32>, vector<2x32xf32> -> vector<2x32xf32>
    %c0_29 = arith.constant 0 : index
    %c0_30 = arith.constant 0 : index
    %39 = vector.load %arg10[%c0_29, %c0_30] : memref<1x32xf32, #tpu.memory_space<vmem>>, vector<1x32xf32>
    %40 = vector.broadcast %39 : vector<1x32xf32> to vector<2x32xf32>
    %41 = arith.addf %38, %40 : vector<2x32xf32>
    %c0_31 = arith.constant 0 : index
    %c0_32 = arith.constant 0 : index
    %42 = vector.load %arg11[%c0_31, %c0_32] : memref<32x32xf32, #tpu.memory_space<vmem>>, vector<32x32xf32>
    %cst_33 = arith.constant dense<0.000000e+00> : vector<2x32xf32>
    %43 = tpu.matmul %14, %42, %cst_33 {dimension_numbers = #tpu.dot_dimension_numbers<[1], [0], [0], [1], [0, 0, 1, 1], [], []>} : vector<2x32xf32>, vector<32x32xf32>, vector<2x32xf32> -> vector<2x32xf32>
    %c0_34 = arith.constant 0 : index
    %c0_35 = arith.constant 0 : index
    %44 = vector.load %arg12[%c0_34, %c0_35] : memref<32x32xf32, #tpu.memory_space<vmem>>, vector<32x32xf32>
    %cst_36 = arith.constant dense<0.000000e+00> : vector<2x32xf32>
    %45 = tpu.matmul %41, %44, %cst_36 {dimension_numbers = #tpu.dot_dimension_numbers<[1], [0], [0], [1], [0, 0, 1, 1], [], []>} : vector<2x32xf32>, vector<32x32xf32>, vector<2x32xf32> -> vector<2x32xf32>
    %46 = arith.addf %43, %45 : vector<2x32xf32>
    %c0_37 = arith.constant 0 : index
    %c0_38 = arith.constant 0 : index
    %47 = vector.load %arg13[%c0_37, %c0_38] : memref<1x32xf32, #tpu.memory_space<vmem>>, vector<1x32xf32>
    %48 = vector.broadcast %47 : vector<1x32xf32> to vector<2x32xf32>
    %49 = arith.addf %46, %48 : vector<2x32xf32>
    %cst_39 = arith.constant 0.000000e+00 : f32
    %50 = vector.broadcast %cst_39 : f32 to vector<2x32xf32>
    %51 = arith.maximumf %49, %50 : vector<2x32xf32>
    %c0_40 = arith.constant 0 : index
    %c0_41 = arith.constant 0 : index
    %52 = vector.load %arg14[%c0_40, %c0_41] : memref<32x64xf32, #tpu.memory_space<vmem>>, vector<32x64xf32>
    %cst_42 = arith.constant dense<0.000000e+00> : vector<2x64xf32>
    %53 = tpu.matmul %51, %52, %cst_42 {dimension_numbers = #tpu.dot_dimension_numbers<[1], [0], [0], [1], [0, 0, 1, 1], [], []>} : vector<2x32xf32>, vector<32x64xf32>, vector<2x64xf32> -> vector<2x64xf32>
    %c0_43 = arith.constant 0 : index
    %c0_44 = arith.constant 0 : index
    %54 = vector.load %arg15[%c0_43, %c0_44] : memref<1x64xf32, #tpu.memory_space<vmem>>, vector<1x64xf32>
    %55 = vector.broadcast %54 : vector<1x64xf32> to vector<2x64xf32>
    %56 = arith.addf %53, %55 : vector<2x64xf32>
    %c0_45 = arith.constant 0 : index
    %c0_46 = arith.constant 0 : index
    %57 = vector.load %arg16[%c0_45, %c0_46] : memref<2x64xf32, #tpu.memory_space<vmem>>, vector<2x64xf32>
    tpu.vector_store %arg16[%c0_45, %c0_46], %56 {strides = array<i32>} : memref<2x64xf32, #tpu.memory_space<vmem>>, vector<2x64xf32>,
    return
  }
  func.func @transform_0(%arg0: i32) -> (i32, i32) {
    %c0_i32 = arith.constant 0 : i32
    %c0_i32_0 = arith.constant 0 : i32
    return %arg0, %c0_i32 : i32, i32
  }
  func.func @transform_1(%arg0: i32) -> (i32, i32) {
    %c0_i32 = arith.constant 0 : i32
    %c0_i32_0 = arith.constant 0 : i32
    %c0_i32_1 = arith.constant 0 : i32
    return %c0_i32, %c0_i32_0 : i32, i32
  }
  func.func @transform_2(%arg0: i32) -> (i32, i32) {
    %c0_i32 = arith.constant 0 : i32
    %c0_i32_0 = arith.constant 0 : i32
    %c0_i32_1 = arith.constant 0 : i32
    return %c0_i32, %c0_i32_0 : i32, i32
  }
  func.func @transform_3(%arg0: i32) -> (i32, i32) {
    %c0_i32 = arith.constant 0 : i32
    %c0_i32_0 = arith.constant 0 : i32
    %c0_i32_1 = arith.constant 0 : i32
    return %c0_i32, %c0_i32_0 : i32, i32
  }
  func.func @transform_4(%arg0: i32) -> (i32, i32) {
    %c0_i32 = arith.constant 0 : i32
    %c0_i32_0 = arith.constant 0 : i32
    %c0_i32_1 = arith.constant 0 : i32
    return %c0_i32, %c0_i32_0 : i32, i32
  }
  func.func @transform_5(%arg0: i32) -> (i32, i32) {
    %c0_i32 = arith.constant 0 : i32
    %c0_i32_0 = arith.constant 0 : i32
    %c0_i32_1 = arith.constant 0 : i32
    return %c0_i32, %c0_i32_0 : i32, i32
  }
  func.func @transform_6(%arg0: i32) -> (i32, i32) {
    %c0_i32 = arith.constant 0 : i32
    %c0_i32_0 = arith.constant 0 : i32
    %c0_i32_1 = arith.constant 0 : i32
    return %c0_i32, %c0_i32_0 : i32, i32
  }
  func.func @transform_7(%arg0: i32) -> (i32, i32) {
    %c0_i32 = arith.constant 0 : i32
    %c0_i32_0 = arith.constant 0 : i32
    %c0_i32_1 = arith.constant 0 : i32
    return %c0_i32, %c0_i32_0 : i32, i32
  }
  func.func @transform_8(%arg0: i32) -> (i32, i32) {
    %c0_i32 = arith.constant 0 : i32
    %c0_i32_0 = arith.constant 0 : i32
    %c0_i32_1 = arith.constant 0 : i32
    return %c0_i32, %c0_i32_0 : i32, i32
  }
  func.func @transform_9(%arg0: i32) -> (i32, i32) {
    %c0_i32 = arith.constant 0 : i32
    %c0_i32_0 = arith.constant 0 : i32
    %c0_i32_1 = arith.constant 0 : i32
    return %c0_i32, %c0_i32_0 : i32, i32
  }
  func.func @transform_10(%arg0: i32) -> (i32, i32) {
    %c0_i32 = arith.constant 0 : i32
    %c0_i32_0 = arith.constant 0 : i32
    %c0_i32_1 = arith.constant 0 : i32
    return %c0_i32, %c0_i32_0 : i32, i32
  }
  func.func @transform_11(%arg0: i32) -> (i32, i32) {
    %c0_i32 = arith.constant 0 : i32
    %c0_i32_0 = arith.constant 0 : i32
    %c0_i32_1 = arith.constant 0 : i32
    return %c0_i32, %c0_i32_0 : i32, i32
  }
  func.func @transform_12(%arg0: i32) -> (i32, i32) {
    %c0_i32 = arith.constant 0 : i32
    %c0_i32_0 = arith.constant 0 : i32
    %c0_i32_1 = arith.constant 0 : i32
    return %c0_i32, %c0_i32_0 : i32, i32
  }
  func.func @transform_13(%arg0: i32) -> (i32, i32) {
    %c0_i32 = arith.constant 0 : i32
    %c0_i32_0 = arith.constant 0 : i32
    %c0_i32_1 = arith.constant 0 : i32
    return %c0_i32, %c0_i32_0 : i32, i32
  }
  func.func @transform_14(%arg0: i32) -> (i32, i32) {
    %c0_i32 = arith.constant 0 : i32
    %c0_i32_0 = arith.constant 0 : i32
    %c0_i32_1 = arith.constant 0 : i32
    return %c0_i32, %c0_i32_0 : i32, i32
  }
  func.func @transform_15(%arg0: i32) -> (i32, i32) {
    %c0_i32 = arith.constant 0 : i32
    %c0_i32_0 = arith.constant 0 : i32
    return %arg0, %c0_i32 : i32, i32
  }
  func.func @transform_16(%arg0: i32) -> (i32, i32) {
    %c0_i32 = arith.constant 0 : i32
    %c0_i32_0 = arith.constant 0 : i32
    return %arg0, %c0_i32 : i32, i32
  }
}

</mosaic_0001>

<bundles_post_ra>
// kernel: tpu_custom_call.1
= control target key start
LH: loop header
LB: loop body
LE: loop exit
PB: predicated region body
PF: predicated region fallthrough
CT: control target
= control target key end

     0   :  { %s2581_s0 = inlined_call_operand.vmem [shape: f32[2,64], index: 0, kind: input, shape index: {}]   ;;  %s2582_s1 = inlined_call_operand.vmem [shape: f32[64,32], index: 1, kind: input, shape index: {}]   ;;  %s2583_s2 = inlined_call_operand.vmem [shape: f32[1,32], index: 2, kind: input, shape index: {}]   ;;  %s2584_s3 = inlined_call_operand.vmem [shape: f32[32,32], index: 3, kind: input, shape index: {}]   ;;  %s2585_s4 = inlined_call_operand.vmem [shape: f32[1,32], index: 4, kind: input, shape index: {}]   ;;  %s2586_s5 = inlined_call_operand.vmem [shape: f32[32,32], index: 5, kind: input, shape index: {}]   ;;  %s2587_s6 = inlined_call_operand.vmem [shape: f32[1,32], index: 6, kind: input, shape index: {}]   ;;  %s2588_s7 = inlined_call_operand.vmem [shape: f32[32,1024], index: 7, kind: input, shape index: {}]   ;;  %s2589_s8 = inlined_call_operand.vmem [shape: f32[1024,32], index: 8, kind: input, shape index: {}]   ;;  %s2590_s9 = inlined_call_operand.vmem [shape: f32[1,32], index: 9, kind: input, shape index: {}]   ;;  %s2591_s10 = inlined_call_operand.vmem [shape: f32[32,32], index: 10, kind: input, shape index: {}]   ;;  %s2592_s11 = inlined_call_operand.vmem [shape: f32[32,32], index: 11, kind: input, shape index: {}]   ;;  %s2593_s12 = inlined_call_operand.vmem [shape: f32[1,32], index: 12, kind: input, shape index: {}]   ;;  %s2594_s13 = inlined_call_operand.vmem [shape: f32[32,64], index: 13, kind: input, shape index: {}]   ;;  %s2595_s14 = inlined_call_operand.vmem [shape: f32[1,64], index: 14, kind: input, shape index: {}]   ;;  %s2596_s15 = inlined_call_operand.hbm [shape: f32[2,64], index: 15, kind: output, shape index: {0}]   ;;  %s2597_s16 = inlined_call_operand.hbm [shape: f32[2,128], index: 16, kind: output, shape index: {1}]  }
   0x1   :  { %2598 = sst [smem:[#allocation8_spill]] %s2581_s0 }
   0x2   :  { %22 = vsyncpa [#allocation3], 0  ;;  %v62_v0 = vld [vmem:[%s2582_s1 + $0x38] sm:$0xff]  ;;  %v1799_v1 = vmov 0.0   ;;  %v61_v2 = vld [vmem:[%s2582_s1 + $0x30] sm:$0xff]  ;;  %vm1800_vm0 = vmmov 0  }
   0x3   :  { %1667 = vmatprep.subr.mxu0 %v1799_v1  ;;  %1683 = vmatprep.mubr.msk.f32.mxu0 %vm1800_vm0, %v1799_v1  ;;  %v60_v3 = vld [vmem:[%s2582_s1 + $0x28] sm:$0xff]  ;;  %v148_v4 = vld [vmem:[%s2584_s3 + $0x18] sm:$0xff] }
   0x4   :  { %1668 = vmatpush3.msra.mxu0 %v62_v0  ;;  %1686 = vmatprep.subr.mxu1 %v1799_v1 }
   0x5   :  { %1669 = vmatprep.subr.mxu0 %v1799_v1  ;;  %1694 = vmatprep.mubr.msk.f32.mxu1 %vm1800_vm0, %v1799_v1 }
   0x6   :  { %23 = vsyncpa [#allocation5], 0  ;;  %1670 = vmatpush3.msra.mxu0 %v61_v2  ;;  %1687 = vmatpush3.msra.mxu1 %v148_v4  ;;  %v59_v5 = vld [vmem:[%s2582_s1 + $0x20] sm:$0xff]  ;;  %v58_v6 = vld [vmem:[%s2582_s1 + $0x18] sm:$0xff]  ;;  %s2599_s26 = sld [smem:[#allocation8_spill]]  ;;  %vm70_vm1 = vcmask 523264  }
   0x7   :  { %1671 = vmatprep.subr.mxu0 %v1799_v1  ;;  %1688 = vmatprep.subr.mxu1 %v1799_v1  ;;  %v57_v7 = vld [vmem:[%s2582_s1 + $0x10] sm:$0xff]  ;;  %v56_v8 = vld [vmem:[%s2582_s1 + $0x8] sm:$0xff]  ;;  %v55_v9 = vld [vmem:[%s2582_s1] sm:$0xff]  ;;  %vm156_vm2 = vcmask 261120   ;;  %vm718_vm3 = vcmask 1041409  }
   0x8   :  { %1672 = vmatpush3.msra.mxu0 %v60_v3  ;;  %v147_v11 = vld [vmem:[%s2584_s3 + $0x10] sm:$0xff]  ;;  %v146_v12 = vld [vmem:[%s2584_s3 + $0x8] sm:$0xff]  ;;  %v145_v13 = vld [vmem:[%s2584_s3] sm:$0xff]  ;;  %v1801_v3 = vmov 1983009808  }
   0x9   :  { %1673 = vmatprep.subr.mxu0 %v1799_v1  ;;  %1689 = vmatpush3.msra.mxu1 %v147_v11  ;;  %v1477_v14 = vld [vmem:[%s2583_s2] ss:$0 sm:$0xff]  ;;  %v234_v19 = vld [vmem:[%s2586_s5 + $0x18] sm:$0xff]  ;;  %v233_v20 = vld [vmem:[%s2586_s5 + $0x10] sm:$0xff]  ;;  %v636_v4 = vunpack.c.l.s4 %v1801_v3  ;;  %v1802_v11 = vmov 1934713408  }
   0xa   :  { %1674 = vmatpush3.msra.mxu0 %v59_v5  ;;  %1690 = vmatprep.subr.mxu1 %v1799_v1  ;;  %v232_v21 = vld [vmem:[%s2586_s5 + $0x8] sm:$0xff]  ;;  %v231_v22 = vld [vmem:[%s2586_s5] sm:$0xff]  ;;  %v342_v24 = vld [vmem:[%s2588_s7 + $0xd8] sm:$0xff]  ;;  %v638_v5 = vlaneseq }
   0xb   :  { %1675 = vmatprep.subr.mxu0 %v1799_v1  ;;  %1691 = vmatpush3.msra.mxu1 %v146_v12  ;;  %v340_v23 = vld [vmem:[%s2588_s7 + $0xc8] sm:$0xff]  ;;  %v339_v25 = vld [vmem:[%s2588_s7 + $0xc0] sm:$0xff]  ;;  %v341_v35 = vld [vmem:[%s2588_s7 + $0xd0] sm:$0xff]  ;;  %v668_v12 = vunpack.c.l.s4 %v1802_v11 }
   0xc   :  { %1676 = vmatpush3.msra.mxu0 %v58_v6  ;;  %v54_v10 = vld [vmem:[%s2599_s26] sm:$0x3]  ;;  %1692 = vmatprep.subr.mxu1 %v1799_v1  ;;  %v332_v26 = vld [vmem:[%s2588_s7 + $0x88] sm:$0xff]  ;;  %v334_v36 = vld [vmem:[%s2588_s7 + $0x98] sm:$0xff] }
   0xd   :  { %1677 = vmatprep.subr.mxu0 %v1799_v1  ;;  %1693 = vmatpush3.msra.mxu1 %v145_v13  ;;  %v331_v27 = vld [vmem:[%s2588_s7 + $0x80] sm:$0xff]  ;;  %v324_v28 = vld [vmem:[%s2588_s7 + $0x48] sm:$0xff]  ;;  %v333_v37 = vld [vmem:[%s2588_s7 + $0x90] sm:$0xff] }
   0xe   :  { %1678 = vmatpush3.msra.mxu0 %v57_v7  ;;  %1697 = vmatprep.subr.mxu1 %v1799_v1  ;;  %v323_v29 = vld [vmem:[%s2588_s7 + $0x40] sm:$0xff]  ;;  %v326_v38 = vld [vmem:[%s2588_s7 + $0x58] sm:$0xff]  ;;  %v325_v39 = vld [vmem:[%s2588_s7 + $0x50] sm:$0xff] }
   0xf   :  { %1679 = vmatprep.subr.mxu0 %v1799_v1  ;;  %v1479_v30 = vld [vmem:[%s2585_s4] ss:$0 sm:$0xff]  ;;  %v316_v40 = vld [vmem:[%s2588_s7 + $0x8] sm:$0xff]  ;;  %v318_v41 = vld [vmem:[%s2588_s7 + $0x18] sm:$0xff]  ;;  %s1803_s4 = smov [#allocation4]  }
  0x10   :  { %1680 = vmatpush3.msra.mxu0 %v56_v8  ;;  %v315_v42 = vld [vmem:[%s2588_s7] sm:$0xff]  ;;  %v317_v43 = vld [vmem:[%s2588_s7 + $0x10] sm:$0xff]  ;;  %v344_v44 = vld [vmem:[%s2588_s7 + $0xe8] sm:$0xff]  ;;  %v637_v8 = vunpack.c.0.s8 %v636_v4  ;;  %s1465_s27 = sshll.u32 %s1803_s4, 4  ;;  %s1466_s27 = int_to_ptr.vmem [resolvable:$true] %s1465_s27 }
  0x11   :  { %1681 = vmatprep.subr.mxu0 %v1799_v1  ;;  %v346_v45 = vld [vmem:[%s2588_s7 + $0xf8] sm:$0xff]  ;;  %v1481_v46 = vld [vmem:[%s2587_s6] ss:$0 sm:$0xff]  ;;  %v345_v50 = vld [vmem:[%s2588_s7 + $0xf0] sm:$0xff]  ;;  %p1760_p1 = scmp.lt.s32.totalorder %s1466_s27, %s1466_s27 }
  0x12   :  { %1682 = vmatpush3.msra.mxu0 %v55_v9  ;;  %v343_v49 = vld [vmem:[%s2588_s7 + $0xe0] sm:$0xff]  ;;  %v336_v52 = vld [vmem:[%s2588_s7 + $0xa8] sm:$0xff]  ;;  %v338_v53 = vld [vmem:[%s2588_s7 + $0xb8] sm:$0xff]  ;;  %v639_v9 = vshrl.u32 %v638_v5, 7 }
  0x13   :  { %1684 = vmatmul.mubr.msk.f32.vlgmr.msra.gmra.mxu0 %vm70_vm1, %v54_v10  ;;  %374 = vmatprep.subr.mxu0 %v340_v23  ;;  %v335_v54 = vld [vmem:[%s2588_s7 + $0xa0] sm:$0xff]  ;;  %v337_v55 = vld [vmem:[%s2588_s7 + $0xb0] sm:$0xff]  ;;  %v328_v56 = vld [vmem:[%s2588_s7 + $0x68] sm:$0xff] }
  0x14   :  { %414 = vmatprep.mubr.f32.mxu0 %v1799_v1  ;;  %375 = vmatpush1.msra.mxu0 %v339_v25  ;;  %v330_v57 = vld [vmem:[%s2588_s7 + $0x78] sm:$0xff]  ;;  %v327_v58 = vld [vmem:[%s2588_s7 + $0x60] sm:$0xff]  ;;  %v329_v59 = vld [vmem:[%s2588_s7 + $0x70] sm:$0xff] }
  0x15   :  { %376 = vmatprep.subr.mxu0 %v332_v26  ;;  %v320_v60 = vld [vmem:[%s2588_s7 + $0x28] sm:$0xff]  ;;  %v322_v61 = vld [vmem:[%s2588_s7 + $0x38] sm:$0xff]  ;;  %v319_v62 = vld [vmem:[%s2588_s7 + $0x20] sm:$0xff] }
  0x16   :  { %377 = vmatpush1.msra.mxu0 %v331_v27  ;;  %v321_v63 = vld [vmem:[%s2588_s7 + $0x30] sm:$0xff]  ;;  %v813_v4 = vld [vmem:[%s2589_s8 + $0xc8] sm:$0xff]  ;;  %v828_v11 = vld [vmem:[%s2589_s8 + $0x140] sm:$0xff] }
  0x17   :  { %378 = vmatprep.subr.mxu0 %v324_v28  ;;  %v830_v3 = vld [vmem:[%s2589_s8 + $0x150] sm:$0xff]  ;;  %v845_v5 = vld [vmem:[%s2589_s8 + $0x1c8] sm:$0xff] }
  0x18   :  { %379 = vmatpush1.msra.mxu0 %v323_v29 }
  0x19   :  { %380 = vmatprep.subr.mxu0 %v316_v40  ;;  %v850_v40 = vld [vmem:[%s2589_s8 + $0x1f0] sm:$0xff] }
  0x1a   :  { %381 = vmatpush1.msra.mxu0 %v315_v42  ;;  %v834_v42 = vld [vmem:[%s2589_s8 + $0x170] sm:$0xff] }
  0x1b   :  { %516 = vmatprep.subr.mxu0 %v344_v44 }
  0xd3   :  { %v140_v15 = vpop.f32.mrf.mxu0 }
  0xd4   :  { %v141_v16 = vadd.f32 %v1477_v14, %v140_v15  ;;  %v2083_v14 = vsub.s32 %v637_v8, %v639_v9  ;;  %v812_v8 = vld [vmem:[%s2589_s8 + $0xc0] sm:$0xff] }
  0xd5   :  { %v1685_v17 = vpop.f32.mrf.mxu0 }
  0xd6   :  { %v144_v18 = vmax.f32 %v141_v16, 0.0 }
  0xd8   :  { %1695 = vmatmul.mubr.msk.f32.vlgmr.msra.gmra.mxu1 %vm156_vm2, %v144_v18 }
  0xd9   :  { %1698 = vmatpush3.msra.mxu1 %v234_v19  ;;  %1705 = vmatprep.mubr.msk.f32.mxu1 %vm1800_vm0, %v1799_v1  ;;  %v669_v19 = vunpack.c.0.s8 %v668_v12  ;;  %v811_v12 = vld [vmem:[%s2589_s8 + $0xb8] sm:$0xff] }
  0xda   :  { %1699 = vmatprep.subr.mxu1 %v1799_v1 }
  0xdb   :  { %1700 = vmatpush3.msra.mxu1 %v233_v20  ;;  %v2089_v27 = vsub.s32 %v669_v19, %v639_v9  ;;  %v844_v9 = vld [vmem:[%s2589_s8 + $0x1c0] sm:$0xff]  ;;  %v794_v19 = vld [vmem:[%s2589_s8 + $0x30] sm:$0xff] }
  0xdc   :  { %1701 = vmatprep.subr.mxu1 %v1799_v1 }
  0xdd   :  { %1702 = vmatpush3.msra.mxu1 %v232_v21 }
  0xde   :  { %1703 = vmatprep.subr.mxu1 %v1799_v1 }
  0xdf   :  { %1704 = vmatpush3.msra.mxu1 %v231_v22 }
  0xe0   :  { %445 = vmatprep.subr.mxu1 %v342_v24 }
 0x198   :  { %v226_v31 = vpop.f32.mrf.mxu1 }
 0x199   :  { %v1992_v32 = vadd.f32 %v1479_v30, %v226_v31 }
 0x19a   :  { %v1696_v33 = vpop.f32.mrf.mxu1 }
 0x19b   :  { %v230_v34 = vmax.f32 %v1992_v32, 0.0  ;;  %v1208_v32 = vld [vmem:[%s2592_s11 + $0x8] sm:$0xff] }
 0x19d   :  { %1706 = vmatmul.mubr.msk.f32.vlgmr.msra.gmra.mxu1 %vm156_vm2, %v230_v34 }
 0x19e   :  { %446 = vmatpush1.msra.mxu1 %v341_v35  ;;  %485 = vmatprep.mubr.f32.mxu1 %v1799_v1  ;;  %v819_v35 = vld [vmem:[%s2589_s8 + $0xf8] sm:$0xff] }
 0x19f   :  { %447 = vmatprep.subr.mxu1 %v334_v36  ;;  %v851_v36 = vld [vmem:[%s2589_s8 + $0x1f8] sm:$0xff] }
 0x1a0   :  { %448 = vmatpush1.msra.mxu1 %v333_v37  ;;  %v803_v37 = vld [vmem:[%s2589_s8 + $0x78] sm:$0xff] }
 0x1a1   :  { %449 = vmatprep.subr.mxu1 %v326_v38  ;;  %v835_v38 = vld [vmem:[%s2589_s8 + $0x178] sm:$0xff] }
 0x1a2   :  { %450 = vmatpush1.msra.mxu1 %v325_v39  ;;  %v818_v39 = vld [vmem:[%s2589_s8 + $0xf0] sm:$0xff] }
 0x1a3   :  { %451 = vmatprep.subr.mxu1 %v318_v41  ;;  %v802_v41 = vld [vmem:[%s2589_s8 + $0x70] sm:$0xff] }
 0x1a4   :  { %452 = vmatpush1.msra.mxu1 %v317_v43 }
 0x1a5   :  { %587 = vmatprep.subr.mxu1 %v346_v45 }
 0x25d   :  { %v311_v47 = vpop.f32.mrf.mxu1 }
 0x25e   :  { %v312_v48 = vadd.f32 %v1481_v46, %v311_v47 }
 0x25f   :  { %v1707_v51 = vpop.f32.mrf.mxu1 }
 0x260   :  { %1483 = vmatmul.mubr.msk.f32.vlgmr.msra.gmra.mxu0 %vm156_vm2, %v312_v48  ;;  %1484 = vmatmul.mubr.msk.f32.vlgmr.msra.gmra.mxu1 %vm156_vm2, %v312_v48  ;;  %v817_v51 = vld [vmem:[%s2589_s8 + $0xe8] sm:$0xff] }
 0x261   :  { %517 = vmatpush1.msra.mxu0 %v343_v49  ;;  %588 = vmatpush1.msra.mxu1 %v345_v50 }
 0x262   :  { %518 = vmatprep.subr.mxu0 %v336_v52  ;;  %589 = vmatprep.subr.mxu1 %v338_v53  ;;  %v849_v52 = vld [vmem:[%s2589_s8 + $0x1e8] sm:$0xff] }
 0x263   :  { %519 = vmatpush1.msra.mxu0 %v335_v54  ;;  %590 = vmatpush1.msra.mxu1 %v337_v55  ;;  %v801_v53 = vld [vmem:[%s2589_s8 + $0x68] sm:$0xff]  ;;  %v816_v55 = vld [vmem:[%s2589_s8 + $0xe0] sm:$0xff] }
 0x264   :  { %520 = vmatprep.subr.mxu0 %v328_v56  ;;  %591 = vmatprep.subr.mxu1 %v330_v57  ;;  %v833_v54 = vld [vmem:[%s2589_s8 + $0x168] sm:$0xff]  ;;  %v848_v56 = vld [vmem:[%s2589_s8 + $0x1e0] sm:$0xff] }
 0x265   :  { %521 = vmatpush1.msra.mxu0 %v327_v58  ;;  %592 = vmatpush1.msra.mxu1 %v329_v59  ;;  %v800_v57 = vld [vmem:[%s2589_s8 + $0x60] sm:$0xff]  ;;  %v815_v59 = vld [vmem:[%s2589_s8 + $0xd8] sm:$0xff] }
 0x266   :  { %522 = vmatprep.subr.mxu0 %v320_v60  ;;  %593 = vmatprep.subr.mxu1 %v322_v61  ;;  %v832_v58 = vld [vmem:[%s2589_s8 + $0x160] sm:$0xff]  ;;  %v847_v60 = vld [vmem:[%s2589_s8 + $0x1d8] sm:$0xff] }
 0x267   :  { %523 = vmatpush1.msra.mxu0 %v319_v62  ;;  %556 = vmatprep.mubr.f32.mxu0 %v1799_v1  ;;  %v799_v61 = vld [vmem:[%s2589_s8 + $0x58] sm:$0xff] }
 0x268   :  { %594 = vmatpush1.msra.mxu1 %v321_v63  ;;  %627 = vmatprep.mubr.f32.mxu1 %v1799_v1  ;;  %v831_v62 = vld [vmem:[%s2589_s8 + $0x158] sm:$0xff]  ;;  %v814_v63 = vld [vmem:[%s2589_s8 + $0xd0] sm:$0xff] }
 0x269   :  { %1485 = vmatmul.mubr.msk.f32.vlgmr.msra.gmra.mxu0 %vm156_vm2, %v312_v48  ;;  %1486 = vmatmul.mubr.msk.f32.vlgmr.msra.gmra.mxu1 %vm156_vm2, %v312_v48 }
 0x26a   :  { %1512 = vmatprep.subr.mxu0 %v819_v35  ;;  %1547 = vmatprep.subr.mxu1 %v851_v36  ;;  %v823_v35 = vld [vmem:[%s2589_s8 + $0x118] sm:$0xff]  ;;  %v806_v36 = vld [vmem:[%s2589_s8 + $0x90] sm:$0xff] }
 0x26b   :  { %1513 = vmatpush3.msra.mxu0 %v803_v37  ;;  %1548 = vmatpush3.msra.mxu1 %v835_v38  ;;  %v838_v37 = vld [vmem:[%s2589_s8 + $0x190] sm:$0xff] }
 0x26c   :  { %1514 = vmatprep.subr.mxu0 %v818_v39  ;;  %1549 = vmatprep.subr.mxu1 %v850_v40  ;;  %v790_v38 = vld [vmem:[%s2589_s8 + $0x10] sm:$0xff]  ;;  %v805_v40 = vld [vmem:[%s2589_s8 + $0x88] sm:$0xff] }
 0x26d   :  { %1515 = vmatpush3.msra.mxu0 %v802_v41  ;;  %1550 = vmatpush3.msra.mxu1 %v834_v42  ;;  %v822_v39 = vld [vmem:[%s2589_s8 + $0x110] sm:$0xff]  ;;  %v837_v41 = vld [vmem:[%s2589_s8 + $0x188] sm:$0xff] }
 0x26e   :  { %1516 = vmatprep.subr.mxu0 %v817_v51  ;;  %1551 = vmatprep.subr.mxu1 %v849_v52  ;;  %v789_v42 = vld [vmem:[%s2589_s8 + $0x8] sm:$0xff]  ;;  %v915_v51 = vld [vmem:[%s2589_s8 + $0x3f8] sm:$0xff] }
 0x26f   :  { %1517 = vmatpush3.msra.mxu0 %v801_v53  ;;  %1552 = vmatpush3.msra.mxu1 %v833_v54 }
 0x270   :  { %1518 = vmatprep.subr.mxu0 %v816_v55  ;;  %1553 = vmatprep.subr.mxu1 %v848_v56 }
 0x271   :  { %1519 = vmatpush3.msra.mxu0 %v800_v57  ;;  %1554 = vmatpush3.msra.mxu1 %v832_v58 }
 0x272   :  { %1520 = vmatprep.subr.mxu0 %v815_v59  ;;  %1555 = vmatprep.subr.mxu1 %v847_v60 }
 0x273   :  { %1521 = vmatpush3.msra.mxu0 %v799_v61  ;;  %1556 = vmatpush3.msra.mxu1 %v831_v62 }
 0x274   :  { %1522 = vmatprep.subr.mxu0 %v814_v63 }
 0x320   :  { %v416_v0 = vpop.f32.mrf.mxu0  ;;  %v487_v2 = vpop.f32.mrf.mxu1 }
 0x321   :  { %v634_v13 = vcombine.low %v416_v0, %v487_v2  ;;  %v846_v0 = vld [vmem:[%s2589_s8 + $0x1d0] sm:$0xff] }
 0x322   :  { %v418_v6 = vpop.f32.mrf.mxu0  ;;  %v489_v7 = vpop.f32.mrf.mxu1  ;;  %1557 = vmatprep.subr.mxu1 %v846_v0  ;;  %v798_v2 = vld [vmem:[%s2589_s8 + $0x50] sm:$0xff] }
 0x323   :  { %v642_v10 = vcombine.low %v418_v6, %v489_v7  ;;  %v641_v22 = vrot.slane %v634_v13, %v2083_v14  ;;  %1523 = vmatpush3.msra.mxu0 %v798_v2  ;;  %1558 = vmatpush3.msra.mxu1 %v830_v3  ;;  %v797_v6 = vld [vmem:[%s2589_s8 + $0x48] sm:$0xff]  ;;  %v843_v13 = vld [vmem:[%s2589_s8 + $0x1b8] sm:$0xff] }
 0x324   :  { %1524 = vmatprep.subr.mxu0 %v813_v4  ;;  %1559 = vmatprep.subr.mxu1 %v845_v5  ;;  %v829_v7 = vld [vmem:[%s2589_s8 + $0x148] sm:$0xff] }
 0x325   :  { %v649_v17 = vrot.slane %v642_v10, %v2083_v14  ;;  %1525 = vmatpush3.msra.mxu0 %v797_v6  ;;  %1560 = vmatpush3.msra.mxu1 %v829_v7  ;;  %v796_v10 = vld [vmem:[%s2589_s8 + $0x40] sm:$0xff] }
 0x326   :  { %1526 = vmatprep.subr.mxu0 %v812_v8  ;;  %1561 = vmatprep.subr.mxu1 %v844_v9 }
 0x327   :  { %v666_v24 = vcombine.low %v641_v22, %v649_v17  ;;  %1527 = vmatpush3.msra.mxu0 %v796_v10  ;;  %1562 = vmatpush3.msra.mxu1 %v828_v11  ;;  %v810_v17 = vld [vmem:[%s2589_s8 + $0xb0] sm:$0xff]  ;;  %v841_v22 = vld [vmem:[%s2589_s8 + $0x1a8] sm:$0xff] }
 0x328   :  { %1528 = vmatprep.subr.mxu0 %v811_v12  ;;  %1563 = vmatprep.subr.mxu1 %v843_v13 }
 0x329   :  { %v558_v15 = vpop.f32.mrf.mxu0  ;;  %v629_v16 = vpop.f32.mrf.mxu1  ;;  %v673_v29 = vrot.slane %v666_v24, %v2089_v27  ;;  %v825_v24 = vld [vmem:[%s2589_s8 + $0x128] sm:$0xff] }
 0x32a   :  { %v650_v18 = vcombine.low %v558_v15, %v629_v16  ;;  %v795_v15 = vld [vmem:[%s2589_s8 + $0x38] sm:$0xff] }
 0x32b   :  { %v560_v20 = vpop.f32.mrf.mxu0  ;;  %v631_v21 = vpop.f32.mrf.mxu1  ;;  %v827_v16 = vld [vmem:[%s2589_s8 + $0x138] sm:$0xff]  ;;  %1529 = vmatpush3.msra.mxu0 %v795_v15 }
 0x32c   :  { %v658_v23 = vcombine.low %v560_v20, %v631_v21  ;;  %v657_v25 = vrot.slane %v650_v18, %v2083_v14  ;;  %1564 = vmatpush3.msra.mxu1 %v827_v16  ;;  %v842_v18 = vld [vmem:[%s2589_s8 + $0x1b0] sm:$0xff]  ;;  %1530 = vmatprep.subr.mxu0 %v810_v17  ;;  %v809_v21 = vld [vmem:[%s2589_s8 + $0xa8] sm:$0xff] }
 0x32d   :  { %1565 = vmatprep.subr.mxu1 %v842_v18  ;;  %v826_v20 = vld [vmem:[%s2589_s8 + $0x130] sm:$0xff]  ;;  %1531 = vmatpush3.msra.mxu0 %v794_v19  ;;  %v899_v18 = vld [vmem:[%s2589_s8 + $0x378] sm:$0xff] }
 0x32e   :  { %v665_v26 = vrot.slane %v658_v23, %v2083_v14  ;;  %1566 = vmatpush3.msra.mxu1 %v826_v20  ;;  %1532 = vmatprep.subr.mxu0 %v809_v21  ;;  %v793_v23 = vld [vmem:[%s2589_s8 + $0x28] sm:$0xff]  ;;  %v882_v20 = vld [vmem:[%s2589_s8 + $0x2f0] sm:$0xff] }
 0x32f   :  { %1567 = vmatprep.subr.mxu1 %v841_v22  ;;  %1533 = vmatpush3.msra.mxu0 %v793_v23  ;;  %v914_v22 = vld [vmem:[%s2589_s8 + $0x3f0] sm:$0xff] }
 0x330   :  { %v674_v28 = vcombine.low %v657_v25, %v665_v26  ;;  %1568 = vmatpush3.msra.mxu1 %v825_v24  ;;  %v808_v25 = vld [vmem:[%s2589_s8 + $0xa0] sm:$0xff] }
 0x331   :  { %v840_v26 = vld [vmem:[%s2589_s8 + $0x1a0] sm:$0xff]  ;;  %1534 = vmatprep.subr.mxu0 %v808_v25  ;;  %v866_v25 = vld [vmem:[%s2589_s8 + $0x270] sm:$0xff] }
 0x332   :  { %v681_v30 = vrot.slane %v674_v28, %v2089_v27  ;;  %1569 = vmatprep.subr.mxu1 %v840_v26  ;;  %v792_v28 = vld [vmem:[%s2589_s8 + $0x20] sm:$0xff]  ;;  %v898_v26 = vld [vmem:[%s2589_s8 + $0x370] sm:$0xff] }
 0x333   :  { %1535 = vmatpush3.msra.mxu0 %v792_v28  ;;  %v881_v28 = vld [vmem:[%s2589_s8 + $0x2e8] sm:$0xff] }
 0x334   :  { %v682_v31 = vcombine.low %v673_v29, %v681_v30  ;;  %v683_v33 = vcombine.high %v673_v29, %v681_v30  ;;  %v824_v29 = vld [vmem:[%s2589_s8 + $0x120] sm:$0xff]  ;;  %v807_v30 = vld [vmem:[%s2589_s8 + $0x98] sm:$0xff] }
 0x335   :  { %1570 = vmatpush3.msra.mxu1 %v824_v29  ;;  %1536 = vmatprep.subr.mxu0 %v807_v30  ;;  %v913_v29 = vld [vmem:[%s2589_s8 + $0x3e8] sm:$0xff] }
 0x336   :  { %684 = vmax.xlane.f32.xlu0 %v682_v31 }
 0x33a   :  { %686 = vmax.xlane.f32.xlu0 %v683_v33 }
 0x3bf   :  { %v685_v43 = vpop.xlane.xlu0 %684 }
 0x3c0   :  { %v688_v44 = vsub.f32 %v682_v31, %v685_v43  ;;  %v839_v31 = vld [vmem:[%s2589_s8 + $0x198] sm:$0xff]  ;;  %v821_v43 = vld [vmem:[%s2589_s8 + $0x108] sm:$0xff] }
 0x3c1   :  { %1571 = vmatprep.subr.mxu1 %v839_v31  ;;  %v865_v31 = vld [vmem:[%s2589_s8 + $0x268] sm:$0xff] }
 0x3c2   :  { %v690_v45 = vmul.f32 1.442695, %v688_v44  ;;  %1572 = vmatpush3.msra.mxu1 %v823_v35  ;;  %v804_v44 = vld [vmem:[%s2589_s8 + $0x80] sm:$0xff] }
 0x3c3   :  { %v687_v46 = vpop.xlane.xlu0 %686  ;;  %1573 = vmatprep.subr.mxu1 %v838_v37  ;;  %v880_v35 = vld [vmem:[%s2589_s8 + $0x2e0] sm:$0xff] }
 0x3c4   :  { %1747 = vpow2.f32 %v690_v45  ;;  %v689_v47 = vsub.f32 %v683_v33, %v687_v46  ;;  %v791_v33 = vld [vmem:[%s2589_s8 + $0x18] sm:$0xff]  ;;  %1574 = vmatpush3.msra.mxu1 %v822_v39  ;;  %v836_v45 = vld [vmem:[%s2589_s8 + $0x180] sm:$0xff] }
 0x3c5   :  { %1537 = vmatpush3.msra.mxu0 %v791_v33  ;;  %1575 = vmatprep.subr.mxu1 %v837_v41  ;;  %v788_v46 = vld [vmem:[%s2589_s8] sm:$0xff]  ;;  %v897_v33 = vld [vmem:[%s2589_s8 + $0x368] sm:$0xff]  ;;  %v879_v41 = vld [vmem:[%s2589_s8 + $0x2d8] sm:$0xff] }
 0x3c6   :  { %v692_v48 = vmul.f32 1.442695, %v689_v47  ;;  %1538 = vmatprep.subr.mxu0 %v806_v36  ;;  %v820_v47 = vld [vmem:[%s2589_s8 + $0x100] sm:$0xff]  ;;  %1576 = vmatpush3.msra.mxu1 %v821_v43 }
 0x3c7   :  { %1539 = vmatpush3.msra.mxu0 %v790_v38  ;;  %1577 = vmatprep.subr.mxu1 %v836_v45  ;;  %v912_v36 = vld [vmem:[%s2589_s8 + $0x3e0] sm:$0xff]  ;;  %v895_v45 = vld [vmem:[%s2589_s8 + $0x358] sm:$0xff] }
 0x3c8   :  { %1749 = vpow2.f32 %v692_v48  ;;  %1540 = vmatprep.subr.mxu0 %v805_v40  ;;  %1578 = vmatpush3.msra.mxu1 %v820_v47  ;;  %v883_v48 = vld [vmem:[%s2589_s8 + $0x2f8] sm:$0xff]  ;;  %v864_v39 = vld [vmem:[%s2589_s8 + $0x260] sm:$0xff]  ;;  %v910_v47 = vld [vmem:[%s2589_s8 + $0x3d0] sm:$0xff] }
 0x3c9   :  { %1541 = vmatpush3.msra.mxu0 %v789_v42  ;;  %1617 = vmatprep.subr.mxu1 %v915_v51  ;;  %v896_v40 = vld [vmem:[%s2589_s8 + $0x360] sm:$0xff]  ;;  %v911_v42 = vld [vmem:[%s2589_s8 + $0x3d8] sm:$0xff]  ;;  %v894_v51 = vld [vmem:[%s2589_s8 + $0x350] sm:$0xff] }
 0x3ca   :  { %1542 = vmatprep.subr.mxu0 %v804_v44  ;;  %v863_v44 = vld [vmem:[%s2589_s8 + $0x258] sm:$0xff] }
 0x3cb   :  { %1543 = vmatpush3.msra.mxu0 %v788_v46  ;;  %v878_v46 = vld [vmem:[%s2589_s8 + $0x2d0] sm:$0xff] }
 0x3cc   :  { %1582 = vmatprep.subr.mxu0 %v883_v48  ;;  %v862_v48 = vld [vmem:[%s2589_s8 + $0x250] sm:$0xff] }
 0x3d1   :  { %v2117_v49 = vpop.eup %1747 }
 0x3d2   :  { %694 = vadd.xlane.f32.xlu1 %v2117_v49 }
 0x3d5   :  { %v2120_v50 = vpop.eup %1749 }
 0x3d6   :  { %696 = vadd.xlane.f32.xlu1 %v2120_v50 }
 0x45b   :  { %v695_v52 = vpop.xlane.xlu1 %694 }
 0x45c   :  { %1751 = vrcp.f32 %v695_v52  ;;  %v877_v52 = vld [vmem:[%s2589_s8 + $0x2c8] sm:$0xff] }
 0x45f   :  { %v697_v53 = vpop.xlane.xlu1 %696 }
 0x460   :  { %1753 = vrcp.f32 %v697_v53  ;;  %v909_v53 = vld [vmem:[%s2589_s8 + $0x3c8] sm:$0xff] }
 0x469   :  { %v1752_v54 = vpop.eup %1751 }
 0x46a   :  { %v699_v55 = vmul.f32 %v1752_v54, %v2117_v49  ;;  %v861_v54 = vld [vmem:[%s2589_s8 + $0x248] sm:$0xff] }
 0x46c   :  { %v702_v56 = vrot.slane %v699_v55, 4  ;;  %v722_v58 = vcombine.high %v699_v55, %v1799_v1  ;;  %v729_v61 = vrot.slane %v699_v55, %v2083_v14 }
 0x46d   :  { %v1754_v57 = vpop.eup %1753 }
 0x46e   :  { %v701_v59 = vmul.f32 %v1754_v57, %v2120_v50  ;;  %v703_v60 = vadd.f32 %v702_v56, %v699_v55  ;;  %v736_v3 = vrot.slane %v722_v58, %v2083_v14  ;;  %v893_v55 = vld [vmem:[%s2589_s8 + $0x348] sm:$0xff]  ;;  %v876_v56 = vld [vmem:[%s2589_s8 + $0x2c0] sm:$0xff] }
 0x46f   :  { %v908_v57 = vld [vmem:[%s2589_s8 + $0x3c0] sm:$0xff] }
 0x470   :  { %v744_v62 = vrot.slane %v701_v59, %v2083_v14  ;;  %v737_v63 = vcombine.high %v701_v59, %v1799_v1  ;;  %v704_v0 = vrot.slane %v703_v60, 2  ;;  %v708_v2 = vrot.slane %v701_v59, 4  ;;  %v860_v58 = vld [vmem:[%s2589_s8 + $0x240] sm:$0xff] }
 0x472   :  { %v752_v4 = vcombine.low %v729_v61, %v744_v62  ;;  %v753_v5 = vcombine.high %v729_v61, %v744_v62  ;;  %v751_v49 = vrot.slane %v737_v63, %v2083_v14  ;;  %v705_v6 = vadd.f32 %v704_v0, %v703_v60  ;;  %v867_v14 = vld [vmem:[%s2589_s8 + $0x278] sm:$0xff]  ;;  %v874_v0 = vld [vmem:[%s2589_s8 + $0x2b0] sm:$0xff] }
 0x473   :  { %v709_v7 = vadd.f32 %v708_v2, %v701_v59  ;;  %v892_v59 = vld [vmem:[%s2589_s8 + $0x340] sm:$0xff]  ;;  %v875_v60 = vld [vmem:[%s2589_s8 + $0x2b8] sm:$0xff]  ;;  %v906_v2 = vld [vmem:[%s2589_s8 + $0x3b0] sm:$0xff] }
 0x474   :  { %v760_v8 = vrot.slane %v752_v4, %v2089_v27  ;;  %v767_v50 = vrot.slane %v753_v5, %v2089_v27  ;;  %v768_v9 = vcombine.low %v736_v3, %v751_v49  ;;  %v769_v10 = vcombine.high %v736_v3, %v751_v49  ;;  %v907_v61 = vld [vmem:[%s2589_s8 + $0x3b8] sm:$0xff]  ;;  %v858_v3 = vld [vmem:[%s2589_s8 + $0x230] sm:$0xff]  ;;  %v873_v5 = vld [vmem:[%s2589_s8 + $0x2a8] sm:$0xff] }
 0x475   :  { %v706_v11 = vrot.slane %v705_v6, 1  ;;  %v710_v12 = vrot.slane %v709_v7, 2  ;;  %v859_v62 = vld [vmem:[%s2589_s8 + $0x238] sm:$0xff]  ;;  %v890_v4 = vld [vmem:[%s2589_s8 + $0x330] sm:$0xff]  ;;  %v905_v49 = vld [vmem:[%s2589_s8 + $0x3a8] sm:$0xff] }
 0x476   :  { %v784_v13 = vcombine.high %v760_v8, %v1799_v1  ;;  %v785_v15 = vcombine.high %v767_v50, %v1799_v1  ;;  %v2310_v16 = vrot.slane %v768_v9, %v2089_v27  ;;  %v2313_v17 = vrot.slane %v769_v10, %v2089_v27  ;;  %v891_v63 = vld [vmem:[%s2589_s8 + $0x338] sm:$0xff]  ;;  %v856_v9 = vld [vmem:[%s2589_s8 + $0x220] sm:$0xff] }
 0x477   :  { %v711_v19 = vadd.f32 %v710_v12, %v709_v7  ;;  %v707_v23 = vadd.f32 %v706_v11, %v705_v6  ;;  %v857_v6 = vld [vmem:[%s2589_s8 + $0x228] sm:$0xff]  ;;  %v888_v10 = vld [vmem:[%s2589_s8 + $0x320] sm:$0xff]  ;;  %v871_v11 = vld [vmem:[%s2589_s8 + $0x298] sm:$0xff] }
 0x478   :  { %987 = vmatprep.mubr.f32.mxu0 %v784_v13  ;;  %1057 = vmatprep.mubr.f32.mxu1 %v785_v15  ;;  %v786_v21 = vcombine.high %v2310_v16, %v1799_v1  ;;  %v787_v27 = vcombine.high %v2313_v17, %v1799_v1  ;;  %v889_v7 = vld [vmem:[%s2589_s8 + $0x328] sm:$0xff]  ;;  %v903_v12 = vld [vmem:[%s2589_s8 + $0x398] sm:$0xff] }
 0x479   :  { %988 = vmatmul.mubr.f32.vlgmr.msra.gmra.mxu0 %v760_v8  ;;  %1058 = vmatmul.mubr.f32.vlgmr.msra.gmra.mxu1 %v767_v50  ;;  %v712_v24 = vrot.slane %v711_v19, 1  ;;  %v714_v37 = vmul.f32 0.125, %v707_v23  ;;  %v872_v8 = vld [vmem:[%s2589_s8 + $0x2a0] sm:$0xff]  ;;  %v855_v13 = vld [vmem:[%s2589_s8 + $0x218] sm:$0xff]  ;;  %v885_v23 = vld [vmem:[%s2589_s8 + $0x308] sm:$0xff] }
 0x47a   :  { %1583 = vmatpush3.msra.mxu0 %v867_v14  ;;  %1618 = vmatpush3.msra.mxu1 %v899_v18  ;;  %v904_v50 = vld [vmem:[%s2589_s8 + $0x3a0] sm:$0xff]  ;;  %v887_v15 = vld [vmem:[%s2589_s8 + $0x318] sm:$0xff]  ;;  %v870_v14 = vld [vmem:[%s2589_s8 + $0x290] sm:$0xff] }
 0x47b   :  { %1584 = vmatprep.subr.mxu0 %v882_v20  ;;  %1127 = vmatprep.mubr.f32.mxu0 %v786_v21  ;;  %v713_v30 = vadd.f32 %v712_v24, %v711_v19  ;;  %v902_v18 = vld [vmem:[%s2589_s8 + $0x390] sm:$0xff]  ;;  %v869_v21 = vld [vmem:[%s2589_s8 + $0x288] sm:$0xff]  ;;  %v868_v24 = vld [vmem:[%s2589_s8 + $0x280] sm:$0xff] }
 0x47c   :  { %1619 = vmatprep.subr.mxu1 %v914_v22  ;;  %1197 = vmatprep.mubr.f32.mxu1 %v787_v27  ;;  %v854_v19 = vld [vmem:[%s2589_s8 + $0x210] sm:$0xff]  ;;  %v901_v27 = vld [vmem:[%s2589_s8 + $0x388] sm:$0xff] }
 0x47d   :  { %1585 = vmatpush3.msra.mxu0 %v866_v25  ;;  %1620 = vmatpush3.msra.mxu1 %v898_v26  ;;  %v715_v38 = vmul.f32 0.125, %v713_v30  ;;  %v886_v20 = vld [vmem:[%s2589_s8 + $0x310] sm:$0xff]  ;;  %v853_v22 = vld [vmem:[%s2589_s8 + $0x208] sm:$0xff]  ;;  %v900_v25 = vld [vmem:[%s2589_s8 + $0x380] sm:$0xff] }
 0x47e   :  { %1586 = vmatprep.subr.mxu0 %v881_v28  ;;  %1621 = vmatprep.subr.mxu1 %v913_v29  ;;  %v852_v26 = vld [vmem:[%s2589_s8 + $0x200] sm:$0xff]  ;;  %v1206_v29 = vld [vmem:[%s2591_s10 + $0x18] sm:$0xff]  ;;  %v1205_v30 = vld [vmem:[%s2591_s10 + $0x10] sm:$0xff] }
 0x47f   :  { %1587 = vmatpush3.msra.mxu0 %v865_v31  ;;  %1622 = vmatpush3.msra.mxu1 %v897_v33  ;;  %v719_v43 = vsel %vm718_vm3, %v715_v38, %v714_v37  ;;  %v884_v28 = vld [vmem:[%s2589_s8 + $0x300] sm:$0xff]  ;;  %v1210_v31 = vld [vmem:[%s2592_s11 + $0x18] sm:$0xff]  ;;  %v1209_v33 = vld [vmem:[%s2592_s11 + $0x10] sm:$0xff]  ;;  %s1755_s8 = scalar_lea.vmem %s1466_s27, 32 }
 0x480   :  { %1588 = vmatprep.subr.mxu0 %v880_v35  ;;  %1623 = vmatprep.subr.mxu1 %v912_v36  ;;  %721 = vst [vmem:[#allocation4] sm:$0x3] %v719_v43  ;;  %p1756_p0 = scmp.ne.s32.totalorder %s1466_s27, %s1755_s8  ;;  %p1761_p2 = scmp.lt.s32.totalorder %s1755_s8, %s1755_s8 }
 0x481   :  { %1589 = vmatpush3.msra.mxu0 %v864_v39  ;;  %1624 = vmatpush3.msra.mxu1 %v896_v40  ;;  %v1487_v39 = vld [vmem:[%s2590_s9] ss:$0 sm:$0xff] }
 0x482   :  { %1590 = vmatprep.subr.mxu0 %v879_v41  ;;  %1625 = vmatprep.subr.mxu1 %v911_v42  ;;  %p1762_p3 = por %p1761_p2, %p1760_p1 }
 0x483   :  { %1591 = vmatpush3.msra.mxu0 %v863_v44  ;;  %1626 = vmatpush3.msra.mxu1 %v895_v45 }
 0x484   :  { %1592 = vmatprep.subr.mxu0 %v878_v46  ;;  %1627 = vmatprep.subr.mxu1 %v910_v47  ;;  %p1763_p4 = pnand %p1762_p3, %p1756_p0 }
 0x485   :  { %1593 = vmatpush3.msra.mxu0 %v862_v48  ;;  %1628 = vmatpush3.msra.mxu1 %v894_v51 }
 0x486   :  { %1594 = vmatprep.subr.mxu0 %v877_v52  ;;  %1629 = vmatprep.subr.mxu1 %v909_v53 }
 0x487   :  { %1595 = vmatpush3.msra.mxu0 %v861_v54  ;;  %1630 = vmatpush3.msra.mxu1 %v893_v55 }
 0x488   :  { %1596 = vmatprep.subr.mxu0 %v876_v56  ;;  %1631 = vmatprep.subr.mxu1 %v908_v57  ;;  %v1366_v56 = vld [vmem:[%s2594_s13 + $0x18] sm:$0xff]  ;;  %v1365_v57 = vld [vmem:[%s2594_s13 + $0x10] sm:$0xff] }
 0x489   :  { %1597 = vmatpush3.msra.mxu0 %v860_v58  ;;  %1632 = vmatpush3.msra.mxu1 %v892_v59  ;;  %v1364_v58 = vld [vmem:[%s2594_s13 + $0x8] sm:$0xff]  ;;  %v1363_v59 = vld [vmem:[%s2594_s13] sm:$0xff] }
 0x48a   :  { %1598 = vmatprep.subr.mxu0 %v875_v60  ;;  %1633 = vmatprep.subr.mxu1 %v907_v61  ;;  %v1490_v61 = vld [vmem:[%s2593_s12] ss:$0 sm:$0xff] }
 0x48b   :  { %1599 = vmatpush3.msra.mxu0 %v859_v62  ;;  %1634 = vmatpush3.msra.mxu1 %v891_v63 }
 0x48c   :  { %1600 = vmatprep.subr.mxu0 %v874_v0  ;;  %1635 = vmatprep.subr.mxu1 %v906_v2 }
 0x48d   :  { %1601 = vmatpush3.msra.mxu0 %v858_v3  ;;  %1636 = vmatpush3.msra.mxu1 %v890_v4 }
 0x48e   :  { %1602 = vmatprep.subr.mxu0 %v873_v5  ;;  %1637 = vmatprep.subr.mxu1 %v905_v49 }
 0x48f   :  { %1603 = vmatpush3.msra.mxu0 %v857_v6  ;;  %1638 = vmatpush3.msra.mxu1 %v889_v7 }
 0x490   :  { %1604 = vmatprep.subr.mxu0 %v872_v8  ;;  %1639 = vmatprep.subr.mxu1 %v904_v50 }
 0x491   :  { %1605 = vmatpush3.msra.mxu0 %v856_v9  ;;  %1640 = vmatpush3.msra.mxu1 %v888_v10 }
 0x492   :  { %1606 = vmatprep.subr.mxu0 %v871_v11  ;;  %1641 = vmatprep.subr.mxu1 %v903_v12 }
 0x493   :  { %1607 = vmatpush3.msra.mxu0 %v855_v13  ;;  %1642 = vmatpush3.msra.mxu1 %v887_v15 }
 0x494   :  { %1608 = vmatprep.subr.mxu0 %v870_v14  ;;  %1643 = vmatprep.subr.mxu1 %v902_v18 }
 0x495   :  { %1609 = vmatpush3.msra.mxu0 %v854_v19  ;;  %1644 = vmatpush3.msra.mxu1 %v886_v20 }
 0x496   :  { %1610 = vmatprep.subr.mxu0 %v869_v21  ;;  %1645 = vmatprep.subr.mxu1 %v901_v27 }
 0x497   :  { %1611 = vmatpush3.msra.mxu0 %v853_v22  ;;  %1646 = vmatpush3.msra.mxu1 %v885_v23 }
 0x498   :  { %1612 = vmatprep.subr.mxu0 %v868_v24  ;;  %1647 = vmatprep.subr.mxu1 %v900_v25 }
 0x499   :  { %1613 = vmatpush3.msra.mxu0 %v852_v26  ;;  %1648 = vmatpush3.msra.mxu1 %v884_v28 }
 0x49a   :  { %1128 = vmatmul.mubr.f32.vlgmr.msra.gmra.mxu0 %v2310_v16  ;;  %1198 = vmatmul.mubr.f32.vlgmr.msra.gmra.mxu1 %v2313_v17  ;;  %v1204_v16 = vld [vmem:[%s2591_s10 + $0x8] sm:$0xff]  ;;  %v1203_v17 = vld [vmem:[%s2591_s10] sm:$0xff] }
 0x49b   :  { %1719 = vmatprep.subr.mxu1 %v1799_v1  ;;  %1727 = vmatprep.mubr.msk.f32.mxu1 %vm1800_vm0, %v1799_v1 }
 0x49c   :  { %1720 = vmatpush3.msra.mxu1 %v1206_v29  ;;  %1708 = vmatprep.subr.mxu0 %v1799_v1 }
 0x49d   :  { %1721 = vmatprep.subr.mxu1 %v1799_v1  ;;  %1716 = vmatprep.mubr.msk.f32.mxu0 %vm1800_vm0, %v1799_v1 }
 0x49e   :  { %1722 = vmatpush3.msra.mxu1 %v1205_v30  ;;  %1709 = vmatpush3.msra.mxu0 %v1210_v31 }
 0x49f   :  { %1723 = vmatprep.subr.mxu1 %v1799_v1  ;;  %1710 = vmatprep.subr.mxu0 %v1799_v1 }
 0x4a0   :  { %1724 = vmatpush3.msra.mxu1 %v1204_v16  ;;  %1711 = vmatpush3.msra.mxu0 %v1209_v33 }
 0x4a1   :  { %1725 = vmatprep.subr.mxu1 %v1799_v1  ;;  %1712 = vmatprep.subr.mxu0 %v1799_v1 }
 0x4a2   :  { %1726 = vmatpush3.msra.mxu1 %v1203_v17  ;;  %1713 = vmatpush3.msra.mxu0 %v1208_v32 }
 0x4a3   :  { %1728 = vmatmul.mubr.msk.f32.vlgmr.msra.gmra.mxu1 %vm156_vm2, %v230_v34  ;;  %v1207_v34 = vld [vmem:[%s2592_s11] sm:$0xff]  ;;  %1714 = vmatprep.subr.mxu0 %v1799_v1 }
 0x4a4   :  { %1715 = vmatpush3.msra.mxu0 %v1207_v34 }
 0x4a5   :  { %1730 = vmatprep.subr.mxu0 %v1799_v1 }
 0x539   :  { %v1544_v35 = vpop.f32.mrf.mxu0  ;;  %v1579_v37 = vpop.f32.mrf.mxu1 }
 0x53b   :  { %v1545_v36 = vpop.f32.mrf.mxu0  ;;  %v1580_v40 = vpop.f32.mrf.mxu1 }
 0x53c   :  { %v1546_v38 = vadd.f32 %v1545_v36, %v1544_v35  ;;  %v1581_v44 = vadd.f32 %v1580_v40, %v1579_v37 }
 0x53e   :  { %v990_v41 = vadd.f32 %v1546_v38, %v1487_v39 }
 0x540   :  { %v1060_v47 = vadd.f32 %v1581_v44, %v990_v41 }
 0x55a   :  { %v1614_v42 = vpop.f32.mrf.mxu0  ;;  %v1649_v43 = vpop.f32.mrf.mxu1 }
 0x55c   :  { %v1615_v45 = vpop.f32.mrf.mxu0  ;;  %v1650_v46 = vpop.f32.mrf.mxu1 }
 0x55d   :  { %v1616_v48 = vadd.f32 %v1615_v45, %v1614_v42  ;;  %v1651_v52 = vadd.f32 %v1650_v46, %v1649_v43 }
 0x55f   :  { %v1130_v51 = vadd.f32 %v1616_v48, %v1060_v47 }
 0x561   :  { %v1200_v53 = vadd.f32 %v1651_v52, %v1130_v51 }
 0x563   :  { %v1350_v54 = vpop.f32.mrf.mxu1  ;;  %1717 = vmatmul.mubr.msk.f32.vlgmr.msra.gmra.mxu0 %vm156_vm2, %v1200_v53 }
 0x564   :  { %1738 = vmatprep.mubr.msk.f32.mxu0 %vm1800_vm0, %v1799_v1  ;;  %1731 = vmatpush3.msra.mxu0 %v1366_v56 }
 0x565   :  { %v1729_v55 = vpop.f32.mrf.mxu1  ;;  %1732 = vmatprep.subr.mxu0 %v1799_v1 }
 0x566   :  { %1733 = vmatpush3.msra.mxu0 %v1365_v57 }
 0x567   :  { %1734 = vmatprep.subr.mxu0 %v1799_v1 }
 0x568   :  { %1735 = vmatpush3.msra.mxu0 %v1364_v58 }
 0x569   :  { %1736 = vmatprep.subr.mxu0 %v1799_v1 }
 0x56a   :  { %1737 = vmatpush3.msra.mxu0 %v1363_v59 }
 0x623   :  { %v1280_v60 = vpop.f32.mrf.mxu0 }
 0x624   :  { %v1351_v62 = vadd.f32 %v1350_v54, %v1280_v60 }
 0x625   :  { %v1718_v63 = vpop.f32.mrf.mxu0 }
 0x626   :  { %v1361_v0 = vadd.f32 %v1490_v61, %v1351_v62 }
 0x628   :  { %v1362_v2 = vmax.f32 %v1361_v0, 0.0 }
 0x62a   :  { %1739 = vmatmul.mubr.msk.f32.vlgmr.msra.gmra.mxu0 %vm156_vm2, %v1362_v2 }
 0x62b   :  { %1766 = shalt.err (!%p1763_p4)
}
 0x62c   :  { %1468 = dma.vmem_to_hbm [thread:$0]  %s1466_s27, 32, %s2597_s16, [#allocation5]   ;;  %v1491_v1 = vld [vmem:[%s2595_s14] ss:$0 sm:$0xff]  ;;  %vm1447_vm4 = vcmask 517120  }
 0x62d   :  { %s1804_s29 = smov [#allocation2]  }
 0x62e   :  { %s1455_s30 = sshll.u32 %s1804_s29, 4  ;;  %s1456_s30 = int_to_ptr.vmem [resolvable:$true] %s1455_s30 }
 0x62f   :  { %s1775_s7 = scalar_lea.vmem %s1456_s30, 32  ;;  %p1780_p6 = scmp.lt.s32.totalorder %s1456_s30, %s1456_s30 }
 0x630   :  { %p1776_p5 = scmp.ne.s32.totalorder %s1456_s30, %s1775_s7  ;;  %p1781_p7 = scmp.lt.s32.totalorder %s1775_s7, %s1775_s7 }
 0x632   :  { %p1782_p8 = por %p1781_p7, %p1780_p6 }
 0x634   :  { %p1783_p9 = pnand %p1782_p8, %p1776_p5 }
 0x6ea   :  { %v1443_v3 = vpop.f32.mrf.mxu0 }
 0x6eb   :  { %v1444_v4 = vadd.f32 %v1491_v1, %v1443_v3 }
 0x6ec   :  { %v1740_v5 = vpop.f32.mrf.mxu0 }
 0x6ed   :  { %1448 = vst.msk [vmem:[#allocation2] sm:$0x3] %vm1447_vm4, %v1444_v4 }
 0x6ee   :  { %1786 = shalt.err (!%p1783_p9)
}
 0x6ef   :  { %1458 = dma.vmem_to_hbm [thread:$0]  %s1456_s30, 32, %s2596_s15, [#allocation3]  }
 0x6f0   :  { %1795 = dma.done.wait [#allocation3], 32  }
 0x6f1   :  { %1796 = vsyncadd [#allocation3], 4294967264 }
 0x6f2   :  { %1797 = dma.done.wait [#allocation5], 32  }
 0x6f3   :  { %1798 = vsyncadd [#allocation5], 4294967264 }
 0x6f4   :  { %1475 = vsyncpa [#allocation3], 1 }
 0x6f5   :  { %1476 = vsyncpa [#allocation5], 1 }

</bundles_post_ra>
